<compile_context>
chip_gen: v6e
topology: v6e:2x2x1
jax: 0.10.0
libtpu: 0.0.40
codegen_flags: <defaults>
</compile_context>

<pallas_src>
import numpy as np
import jax
import jax.numpy as jnp
from jax.experimental import pallas as pl
from jax.experimental.pallas import tpu as pltpu

_LANES = 128
_SUBLANES = 8
_MAX_TILE_ROWS = 512     # 512 x 128 f32 = 256 KiB per rgb input tile


def _loss_kernel(rgb_pred_ref, rgb_gt_ref, diff_ref, occ_ref, sel_ref,
                 dpred_ref, dgt_ref, out_ref, acc_ref, small_ref):
    step = pl.program_id(0)
    nsteps = pl.num_programs(0)

    @pl.when(step == 0)
    def _init():
        acc_ref[...] = jnp.zeros_like(acc_ref)
        # Small-array reductions (whole arrays resident in VMEM) — done once.
        diff_sum = jnp.sum(diff_ref[...].astype(jnp.float32))
        mask_sum = jnp.sum(jnp.abs(
            (occ_ref[...].astype(jnp.float32) + 0.5)
            - sel_ref[...].astype(jnp.float32)))
        dg = dgt_ref[...].astype(jnp.float32)
        dp = dpred_ref[...].astype(jnp.float32)
        depth_sum = jnp.sum(jnp.where(dg != 0.0, jnp.abs(dp - dg),
                                      jnp.float32(0.0)))
        small_ref[0] = diff_sum
        small_ref[1] = mask_sum
        small_ref[2] = depth_sum

    # rgb |pred - gt| partial sum for this tile, accumulated into an
    # (8, 128) vreg-shaped f32 accumulator: per-tile work is pure VALU adds,
    # the single cross-lane/sublane reduce happens only at finalize.
    rp = rgb_pred_ref[...].astype(jnp.float32)
    rg = rgb_gt_ref[...].astype(jnp.float32)
    d = jnp.abs(rp - rg)                                    # (TR, 128)
    acc_ref[...] += jnp.sum(d.reshape(-1, _SUBLANES, _LANES), axis=0)

    @pl.when(step == nsteps - 1)
    def _finalize():
        out_ref[0] = jnp.sum(acc_ref[...])   # one XLU reduce total
        out_ref[1] = small_ref[0]
        out_ref[2] = small_ref[1]
        out_ref[3] = small_ref[2]


def _pad_to_lane_rows(flat, pad_value, row_multiple=_SUBLANES):
    """Reshape a flat 1-D array to a sublane-dense (rows, 128) layout,
    padding with `pad_value` so rows is a multiple of `row_multiple`."""
    length = int(flat.shape[0])
    rows = max(1, -(-length // _LANES))
    rows = -(-rows // row_multiple) * row_multiple
    total = rows * _LANES
    if total != length:
        flat = jnp.pad(flat, (0, total - length), constant_values=pad_value)
    return flat.reshape(rows, _LANES)


def loss_forward(cfg, out_dict):
    tr = cfg['training']
    full_w = float(tr['lambda_l1_rgb'])
    grad_w = float(tr['lambda_normals'])
    depth_diff_w = float(tr['lambda_depth_diff'])
    mh_w = float(tr['lambda_mh'])
    iou_w = float(tr['lambda_iou'])
    depth_loss_w = float(tr['lambda_iou'])   # same cfg key, as in the module

    # Native dtype kept for the hot-path arrays (rgb / depth); cast in-kernel.
    rgb_gt = jnp.asarray(out_dict['rgb_gt'])
    rgb_pred = jnp.asarray(out_dict['rgb_pred'])
    mask_gt = jnp.asarray(out_dict['mask_gt'])
    mask_pred = jnp.asarray(out_dict['mask_pred'])
    diff_norm = out_dict['normal']
    mask_occ = jnp.asarray(out_dict['surface_points_occ'])
    mh_loss = jnp.asarray(out_dict['mh_loss'], jnp.float32)
    depth_loss = jnp.asarray(out_dict['depth_loss'], jnp.float32)
    iou_loss = jnp.asarray(out_dict['iou_loss'], jnp.float32)
    depth_pred = jnp.asarray(out_dict['depth_pred'])
    depth_gt = jnp.asarray(out_dict['depth_gt'])

    rgb_div = float(rgb_pred.shape[1])

    # mask_gt.squeeze(0).squeeze(1); mask_pred.squeeze(0)
    mask_gt_flat = jnp.squeeze(jnp.squeeze(mask_gt, axis=0), axis=1)
    mask_pred_flat = jnp.squeeze(mask_pred, axis=0).astype(bool)

    n_occ = int(mask_occ.shape[0])
    # Glue: boolean fancy indexing mask_gt[mask_pred] with static size n_occ
    # (the PyTorch code requires len(mask_gt[mask_pred]) == mask_occ.shape[0]).
    sel_idx = jnp.nonzero(mask_pred_flat, size=n_occ)[0]
    mask_gt_sel = jnp.take(mask_gt_flat, sel_idx).astype(jnp.float32)
    occ_flat = jnp.reshape(mask_occ, (-1,)).astype(jnp.float32)

    if diff_norm is None:
        diff_flat = jnp.zeros((1,), jnp.float32)
        n_diff = 0
    else:
        diff_flat = jnp.reshape(jnp.asarray(diff_norm), (-1,))
        n_diff = int(diff_flat.shape[0])
        if n_diff == 0:
            diff_flat = jnp.zeros((1,), jnp.float32)

    # ---- sublane-dense 2-D layouts ----
    rgb_pred_flat = jnp.reshape(rgb_pred, (-1,))
    rgb_gt_flat = jnp.reshape(rgb_gt, (-1,))
    rgb_rows = max(1, -(-int(rgb_pred_flat.shape[0]) // _LANES))
    rgb_rows = -(-rgb_rows // _SUBLANES) * _SUBLANES
    tile_rows = min(_MAX_TILE_ROWS, rgb_rows)
    rgb_pred_2d = _pad_to_lane_rows(rgb_pred_flat, 0, row_multiple=tile_rows)
    rgb_gt_2d = _pad_to_lane_rows(rgb_gt_flat, 0, row_multiple=tile_rows)
    n_tiles = rgb_pred_2d.shape[0] // tile_rows

    diff_2d = _pad_to_lane_rows(diff_flat, 0.0)
    # pad occ with 0 and sel with 0.5 so padded lanes give |0+0.5-0.5| = 0
    occ_2d = _pad_to_lane_rows(occ_flat, 0.0)
    sel_2d = _pad_to_lane_rows(mask_gt_sel, 0.5)
    dpred_2d = _pad_to_lane_rows(jnp.reshape(depth_pred, (-1,)), 0.0)
    dgt_2d = _pad_to_lane_rows(jnp.reshape(depth_gt, (-1,)), 0.0)

    def full_block(arr):  # whole-array block, constant index across the grid
        return pl.BlockSpec(arr.shape, lambda i: (0, 0))

    grid_spec = pltpu.PrefetchScalarGridSpec(
        num_scalar_prefetch=0,
        grid=(n_tiles,),
        in_specs=[
            pl.BlockSpec((tile_rows, _LANES), lambda i: (i, 0)),  # rgb_pred
            pl.BlockSpec((tile_rows, _LANES), lambda i: (i, 0)),  # rgb_gt
            full_block(diff_2d),
            full_block(occ_2d),
            full_block(sel_2d),
            full_block(dpred_2d),
            full_block(dgt_2d),
        ],
        out_specs=pl.BlockSpec((4,), lambda i: (0,),
                               memory_space=pltpu.MemorySpace.SMEM),
        scratch_shapes=[
            pltpu.VMEM((_SUBLANES, _LANES), jnp.float32),   # rgb accumulator
            pltpu.SMEM((3,), jnp.float32),                  # small-array sums
        ],
    )

    total_bytes = int(sum(int(a.size) * a.dtype.itemsize for a in
                          (rgb_pred_2d, rgb_gt_2d, diff_2d, occ_2d, sel_2d,
                           dpred_2d, dgt_2d))) + 4 * 4
    total_flops = int(3 * rgb_pred_2d.size + 3 * dpred_2d.size
                      + 3 * occ_2d.size + diff_2d.size)

    sums = pl.pallas_call(
        _loss_kernel,
        out_shape=jax.ShapeDtypeStruct((4,), jnp.float32),
        grid_spec=grid_spec,
        compiler_params=pltpu.CompilerParams(
            dimension_semantics=("arbitrary",)),
        cost_estimate=pl.CostEstimate(flops=total_flops, transcendentals=0,
                                      bytes_accessed=total_bytes),
    )(rgb_pred_2d, rgb_gt_2d, diff_2d, occ_2d, sel_2d, dpred_2d, dgt_2d)

    rgb_sum, diff_sum, mask_sum, depth_sum = sums[0], sums[1], sums[2], sums[3]

    # ---- scalar combine (free in XLA; no vector hardware needed) ----
    if full_w != 0.0:  # static python check, same as the PyTorch module
        rgb_full_loss = rgb_sum / jnp.float32(rgb_div)
    else:
        rgb_full_loss = jnp.float32(0.0)

    if diff_norm is not None and grad_w != 0.0 and n_diff > 0:
        grad_loss = diff_sum / jnp.float32(n_diff)
    else:
        grad_loss = jnp.float32(0.0)

    mask_loss = mask_sum / jnp.float32(n_occ + 0.01)
    depth_gt_loss = depth_sum

    loss = (full_w * rgb_full_loss
            + grad_w * grad_loss
            - mh_w * mh_loss
            + iou_w * iou_loss
            + depth_diff_w * depth_loss
            + depth_loss_w * depth_gt_loss)
    # TODO(synk): torch.isnan(loss) -> breakpoint() debugging hook is omitted.

    return {
        'loss': loss,
        'fullrgb_loss': rgb_full_loss,
        'grad_loss': grad_loss,
        'mask_loss': mask_loss,
        'mh_loss': mh_loss,
        'depth_loss': depth_loss,
        'iou_loss': iou_loss,
        'depth_gt_loss': depth_gt_loss,
    }


def _numpy_reference(cfg, out_dict):
    tr = cfg['training']
    rp = np.asarray(out_dict['rgb_pred'], np.float64)
    rg = np.asarray(out_dict['rgb_gt'], np.float64)
    rgb_full = np.sum(np.abs(rp - rg)) / float(rp.shape[1])
    dn = out_dict['normal']
    if dn is None or np.asarray(dn).size == 0 or float(tr['lambda_normals']) == 0.0:
        grad = 0.0
    else:
        grad = float(np.mean(np.asarray(dn, np.float64)))
    mgf = np.squeeze(np.squeeze(np.asarray(out_dict['mask_gt'], np.float64), 0), 1)
    mpf = np.squeeze(np.asarray(out_dict['mask_pred']), 0).astype(bool)
    sel = mgf[mpf]
    occ = np.asarray(out_dict['surface_points_occ'], np.float64).reshape(-1)
    mask_loss = np.sum(np.abs((occ + 0.5) - sel)) / (occ.shape[0] + 0.01)
    dg = np.asarray(out_dict['depth_gt'], np.float64)
    dp = np.asarray(out_dict['depth_pred'], np.float64)
    m = dg != 0
    dgt = np.sum(np.abs(dp[m] - dg[m]))
    loss = (tr['lambda_l1_rgb'] * rgb_full + tr['lambda_normals'] * grad
            - tr['lambda_mh'] * float(out_dict['mh_loss'])
            + tr['lambda_iou'] * float(out_dict['iou_loss'])
            + tr['lambda_depth_diff'] * float(out_dict['depth_loss'])
            + tr['lambda_iou'] * dgt)
    return {'loss': loss, 'fullrgb_loss': rgb_full, 'grad_loss': grad,
            'mask_loss': mask_loss, 'depth_gt_loss': dgt}


def _check(res, ref, rtol, atol):
    for k in ('loss', 'fullrgb_loss', 'grad_loss', 'mask_loss',
              'depth_gt_loss'):
        np.testing.assert_allclose(float(res[k]), ref[k], rtol=rtol, atol=atol)


if __name__ == "__main__":
    cfg = {'training': {
        'lambda_l1_rgb': 1.0,
        'lambda_normals': 0.1,
        'lambda_occ_prob': 0.01,
        'lambda_depth_diff': 0.5,
        'lambda_iou': 0.2,
        'lambda_mh': 0.05,
    }}

    # ---- test 1: tiny shapes (single tile, grid = 1) ----
    key = jax.random.PRNGKey(0)
    ks = jax.random.split(key, 10)
    N = 8      # number of rays / pixels
    K = 5      # number of predicted-surface points (== mask_pred.sum())
    M = 6      # number of normal-difference samples

    rgb_gt = jax.random.uniform(ks[0], (1, N, 3), jnp.float32)
    rgb_pred = jax.random.uniform(ks[1], (1, N, 3), jnp.float32)
    mask_gt = (jax.random.uniform(ks[2], (1, N, 1)) > 0.5).astype(jnp.float32)
    mask_pred = jnp.array(
        [[True, False, True, True, False, True, False, True]])  # 5 trues
    mask_occ = jax.random.uniform(ks[3], (K, 1, 1), jnp.float32)
    diff_norm = jax.random.uniform(ks[4], (M,), jnp.float32)
    mh_loss = jnp.float32(0.3)
    depth_loss = jnp.float32(0.7)
    iou_loss = jnp.float32(0.4)
    depth_pred = jax.random.uniform(ks[5], (N,), jnp.float32)
    depth_gt = (jax.random.uniform(ks[6], (N,), jnp.float32)
                * (jax.random.uniform(ks[7], (N,)) > 0.4).astype(jnp.float32))

    out_dict = {
        'rgb_gt': rgb_gt, 'mask_gt': mask_gt, 'mask_pred': mask_pred,
        'rgb_pred': rgb_pred, 'normal': diff_norm,
        'surface_points_occ': mask_occ, 'mh_loss': mh_loss,
        'depth_loss': depth_loss, 'iou_loss': iou_loss,
        'depth_pred': depth_pred, 'depth_gt': depth_gt,
    }

    res = loss_forward(cfg, out_dict)
    jax.block_until_ready(res['loss'])
    _check(res, _numpy_reference(cfg, out_dict), rtol=1e-5, atol=1e-5)

    # ---- test 2: larger shapes (multi-tile rgb path, grid > 1) ----
    N2, K2, M2, NM = 50000, 37, 300, 128
    kb = jax.random.split(jax.random.PRNGKey(1), 10)
    rgb_gt2 = jax.random.uniform(kb[0], (1, N2, 3), jnp.float32)
    rgb_pred2 = jax.random.uniform(kb[1], (1, N2, 3), jnp.float32)
    mask_gt2 = (jax.random.uniform(kb[2], (1, NM, 1)) > 0.5).astype(jnp.float32)
    mp = np.zeros((NM,), bool)
    mp[np.arange(0, NM, NM // K2)[:K2]] = True          # exactly K2 trues
    mask_pred2 = jnp.asarray(mp[None, :])
    mask_occ2 = jax.random.uniform(kb[3], (K2, 1, 1), jnp.float32)
    diff_norm2 = jax.random.uniform(kb[4], (M2,), jnp.float32)
    depth_pred2 = jax.random.uniform(kb[5], (N2,), jnp.float32)
    depth_gt2 = (jax.random.uniform(kb[6], (N2,), jnp.float32)
                 * (jax.random.uniform(kb[7], (N2,)) > 0.4).astype(jnp.float32))

    out_dict2 = {
        'rgb_gt': rgb_gt2, 'mask_gt': mask_gt2, 'mask_pred': mask_pred2,
        'rgb_pred': rgb_pred2, 'normal': diff_norm2,
        'surface_points_occ': mask_occ2, 'mh_loss': jnp.float32(0.11),
        'depth_loss': jnp.float32(0.22), 'iou_loss': jnp.float32(0.33),
        'depth_pred': depth_pred2, 'depth_gt': depth_gt2,
    }

    res2 = loss_forward(cfg, out_dict2)
    jax.block_until_ready(res2['loss'])
    _check(res2, _numpy_reference(cfg, out_dict2), rtol=1e-4, atol=1e-3)

    print("KERNEL_OK")
</pallas_src>

<mosaic_0001>
module attributes {stable_mosaic.version = 11 : i64} {
  func.func @_loss_kernel(%arg0: i32, %arg1: memref<8x128xf32, #tpu.memory_space<vmem>>, %arg2: memref<8x128xf32, #tpu.memory_space<vmem>>, %arg3: memref<8x128xf32, #tpu.memory_space<vmem>>, %arg4: memref<8x128xf32, #tpu.memory_space<vmem>>, %arg5: memref<8x128xf32, #tpu.memory_space<vmem>>, %arg6: memref<8x128xf32, #tpu.memory_space<vmem>>, %arg7: memref<8x128xf32, #tpu.memory_space<vmem>>, %arg8: memref<4xf32, #tpu.memory_space<smem>>, %arg9: memref<8x128xf32, #tpu.memory_space<vmem>>, %arg10: memref<3xf32, #tpu.memory_space<smem>>) attributes {dimension_semantics = [#tpu.dimension_semantics<arbitrary>], iteration_bounds = array<i64: 1>, scalar_prefetch = 0 : i64, scratch_operands = 2 : i64, tpu.core_type = #tpu.core_type<tc>, window_params = [{transform_indices = @transform_0, window_bounds = array<i64: 8, 128>}, {transform_indices = @transform_1, window_bounds = array<i64: 8, 128>}, {pipeline_mode = #tpu.pipeline_mode<synchronous>, transform_indices = @transform_2, window_bounds = array<i64: 8, 128>}, {pipeline_mode = #tpu.pipeline_mode<synchronous>, transform_indices = @transform_3, window_bounds = array<i64: 8, 128>}, {pipeline_mode = #tpu.pipeline_mode<synchronous>, transform_indices = @transform_4, window_bounds = array<i64: 8, 128>}, {pipeline_mode = #tpu.pipeline_mode<synchronous>, transform_indices = @transform_5, window_bounds = array<i64: 8, 128>}, {pipeline_mode = #tpu.pipeline_mode<synchronous>, transform_indices = @transform_6, window_bounds = array<i64: 8, 128>}, {transform_indices = @transform_7, window_bounds = array<i64: 4>}]} {
    %c0_i32 = arith.constant 0 : i32
    %0 = arith.cmpi eq, %arg0, %c0_i32 : i32
    %1 = arith.extui %0 : i1 to i32
    %c0_i32_0 = arith.constant 0 : i32
    %2 = arith.cmpi ne, %1, %c0_i32_0 : i32
    scf.if %2 {
      %cst_10 = arith.constant 0.000000e+00 : f32
      %15 = vector.broadcast %cst_10 : f32 to vector<8x128xf32>
      %c0_11 = arith.constant 0 : index
      %c0_12 = arith.constant 0 : index
      %16 = vector.load %arg9[%c0_11, %c0_12] : memref<8x128xf32, #tpu.memory_space<vmem>>, vector<8x128xf32>
      tpu.vector_store %arg9[%c0_11, %c0_12], %15 {strides = array<i32>} : memref<8x128xf32, #tpu.memory_space<vmem>>, vector<8x128xf32>,
      %c0_13 = arith.constant 0 : index
      %c0_14 = arith.constant 0 : index
      %17 = vector.load %arg3[%c0_13, %c0_14] : memref<8x128xf32, #tpu.memory_space<vmem>>, vector<8x128xf32>
      %18 = vector.shape_cast %17 : vector<8x128xf32> to vector<1x8x128xf32>
      %cst_15 = arith.constant dense<0.000000e+00> : vector<1xf32>
      %19 = vector.multi_reduction <add>, %18, %cst_15 [1, 2] : vector<1x8x128xf32> to vector<1xf32>
      %20 = vector.shape_cast %19 : vector<1xf32> to vector<1x1x1xf32>
      %21 = vector.extract %20[0, 0, 0] : f32 from vector<1x1x1xf32>
      %c0_16 = arith.constant 0 : index
      %c0_17 = arith.constant 0 : index
      %22 = vector.load %arg4[%c0_16, %c0_17] : memref<8x128xf32, #tpu.memory_space<vmem>>, vector<8x128xf32>
      %cst_18 = arith.constant 5.000000e-01 : f32
      %23 = vector.broadcast %cst_18 : f32 to vector<8x128xf32>
      %24 = arith.addf %22, %23 : vector<8x128xf32>
      %c0_19 = arith.constant 0 : index
      %c0_20 = arith.constant 0 : index
      %25 = vector.load %arg5[%c0_19, %c0_20] : memref<8x128xf32, #tpu.memory_space<vmem>>, vector<8x128xf32>
      %26 = arith.subf %24, %25 : vector<8x128xf32>
      %27 = math.absf %26 : vector<8x128xf32>
      %28 = vector.shape_cast %27 : vector<8x128xf32> to vector<1x8x128xf32>
      %cst_21 = arith.constant dense<0.000000e+00> : vector<1xf32>
      %29 = vector.multi_reduction <add>, %28, %cst_21 [1, 2] : vector<1x8x128xf32> to vector<1xf32>
      %30 = vector.shape_cast %29 : vector<1xf32> to vector<1x1x1xf32>
      %31 = vector.extract %30[0, 0, 0] : f32 from vector<1x1x1xf32>
      %c0_22 = arith.constant 0 : index
      %c0_23 = arith.constant 0 : index
      %32 = vector.load %arg7[%c0_22, %c0_23] : memref<8x128xf32, #tpu.memory_space<vmem>>, vector<8x128xf32>
      %c0_24 = arith.constant 0 : index
      %c0_25 = arith.constant 0 : index
      %33 = vector.load %arg6[%c0_24, %c0_25] : memref<8x128xf32, #tpu.memory_space<vmem>>, vector<8x128xf32>
      %cst_26 = arith.constant 0.000000e+00 : f32
      %34 = vector.broadcast %cst_26 : f32 to vector<8x128xf32>
      %35 = arith.cmpf one, %32, %34 : vector<8x128xf32>
      %36 = arith.subf %33, %32 : vector<8x128xf32>
      %37 = math.absf %36 : vector<8x128xf32>
      %cst_27 = arith.constant 0.000000e+00 : f32
      %38 = vector.broadcast %cst_27 : f32 to vector<8x128xf32>
      %39 = arith.select %35, %37, %38 : vector<8x128xi1>, vector<8x128xf32>
      %40 = vector.shape_cast %39 : vector<8x128xf32> to vector<1x8x128xf32>
      %cst_28 = arith.constant dense<0.000000e+00> : vector<1xf32>
      %41 = vector.multi_reduction <add>, %40, %cst_28 [1, 2] : vector<1x8x128xf32> to vector<1xf32>
      %42 = vector.shape_cast %41 : vector<1xf32> to vector<1x1x1xf32>
      %43 = vector.extract %42[0, 0, 0] : f32 from vector<1x1x1xf32>
      %c0_29 = arith.constant 0 : index
      %44 = memref.load %arg10[%c0_29] : memref<3xf32, #tpu.memory_space<smem>>
      memref.store %21, %arg10[%c0_29] : memref<3xf32, #tpu.memory_space<smem>>
      %c1 = arith.constant 1 : index
      %45 = memref.load %arg10[%c1] : memref<3xf32, #tpu.memory_space<smem>>
      memref.store %31, %arg10[%c1] : memref<3xf32, #tpu.memory_space<smem>>
      %c2 = arith.constant 2 : index
      %46 = memref.load %arg10[%c2] : memref<3xf32, #tpu.memory_space<smem>>
      memref.store %43, %arg10[%c2] : memref<3xf32, #tpu.memory_space<smem>>
    } else {
    }
    %c0 = arith.constant 0 : index
    %c0_1 = arith.constant 0 : index
    %3 = vector.load %arg1[%c0, %c0_1] : memref<8x128xf32, #tpu.memory_space<vmem>>, vector<8x128xf32>
    %c0_2 = arith.constant 0 : index
    %c0_3 = arith.constant 0 : index
    %4 = vector.load %arg2[%c0_2, %c0_3] : memref<8x128xf32, #tpu.memory_space<vmem>>, vector<8x128xf32>
    %5 = arith.subf %3, %4 : vector<8x128xf32>
    %6 = math.absf %5 : vector<8x128xf32>
    %c0_4 = arith.constant 0 : index
    %c0_5 = arith.constant 0 : index
    %7 = vector.load %arg9[%c0_4, %c0_5] : memref<8x128xf32, #tpu.memory_space<vmem>>, vector<8x128xf32>
    %8 = vector.shape_cast %6 : vector<8x128xf32> to vector<1x8x128xf32>
    %cst = arith.constant dense<0.000000e+00> : vector<8x128xf32>
    %9 = vector.multi_reduction <add>, %8, %cst [0] : vector<1x8x128xf32> to vector<8x128xf32>
    %10 = arith.addf %7, %9 : vector<8x128xf32>
    %c0_6 = arith.constant 0 : index
    %c0_7 = arith.constant 0 : index
    %11 = vector.load %arg9[%c0_6, %c0_7] : memref<8x128xf32, #tpu.memory_space<vmem>>, vector<8x128xf32>
    tpu.vector_store %arg9[%c0_6, %c0_7], %10 {strides = array<i32>} : memref<8x128xf32, #tpu.memory_space<vmem>>, vector<8x128xf32>,
    %c0_i32_8 = arith.constant 0 : i32
    %12 = arith.cmpi eq, %arg0, %c0_i32_8 : i32
    %13 = arith.extui %12 : i1 to i32
    %c0_i32_9 = arith.constant 0 : i32
    %14 = arith.cmpi ne, %13, %c0_i32_9 : i32
    scf.if %14 {
      %c0_10 = arith.constant 0 : index
      %c0_11 = arith.constant 0 : index
      %15 = vector.load %arg9[%c0_10, %c0_11] : memref<8x128xf32, #tpu.memory_space<vmem>>, vector<8x128xf32>
      %16 = vector.shape_cast %15 : vector<8x128xf32> to vector<1x8x128xf32>
      %cst_12 = arith.constant dense<0.000000e+00> : vector<1xf32>
      %17 = vector.multi_reduction <add>, %16, %cst_12 [1, 2] : vector<1x8x128xf32> to vector<1xf32>
      %18 = vector.shape_cast %17 : vector<1xf32> to vector<1x1x1xf32>
      %19 = vector.extract %18[0, 0, 0] : f32 from vector<1x1x1xf32>
      %c0_13 = arith.constant 0 : index
      %20 = memref.load %arg8[%c0_13] : memref<4xf32, #tpu.memory_space<smem>>
      memref.store %19, %arg8[%c0_13] : memref<4xf32, #tpu.memory_space<smem>>
      %c0_14 = arith.constant 0 : index
      %21 = memref.load %arg10[%c0_14] : memref<3xf32, #tpu.memory_space<smem>>
      %c1 = arith.constant 1 : index
      %22 = memref.load %arg8[%c1] : memref<4xf32, #tpu.memory_space<smem>>
      memref.store %21, %arg8[%c1] : memref<4xf32, #tpu.memory_space<smem>>
      %c1_15 = arith.constant 1 : index
      %23 = memref.load %arg10[%c1_15] : memref<3xf32, #tpu.memory_space<smem>>
      %c2 = arith.constant 2 : index
      %24 = memref.load %arg8[%c2] : memref<4xf32, #tpu.memory_space<smem>>
      memref.store %23, %arg8[%c2] : memref<4xf32, #tpu.memory_space<smem>>
      %c2_16 = arith.constant 2 : index
      %25 = memref.load %arg10[%c2_16] : memref<3xf32, #tpu.memory_space<smem>>
      %c3 = arith.constant 3 : index
      %26 = memref.load %arg8[%c3] : memref<4xf32, #tpu.memory_space<smem>>
      memref.store %25, %arg8[%c3] : memref<4xf32, #tpu.memory_space<smem>>
    } else {
    }
    return
  }
  func.func @transform_0(%arg0: i32) -> (i32, i32) {
    %c0_i32 = arith.constant 0 : i32
    %c0_i32_0 = arith.constant 0 : i32
    return %arg0, %c0_i32 : i32, i32
  }
  func.func @transform_1(%arg0: i32) -> (i32, i32) {
    %c0_i32 = arith.constant 0 : i32
    %c0_i32_0 = arith.constant 0 : i32
    return %arg0, %c0_i32 : i32, i32
  }
  func.func @transform_2(%arg0: i32) -> (i32, i32) {
    %c0_i32 = arith.constant 0 : i32
    %c0_i32_0 = arith.constant 0 : i32
    %c0_i32_1 = arith.constant 0 : i32
    return %c0_i32, %c0_i32_0 : i32, i32
  }
  func.func @transform_3(%arg0: i32) -> (i32, i32) {
    %c0_i32 = arith.constant 0 : i32
    %c0_i32_0 = arith.constant 0 : i32
    %c0_i32_1 = arith.constant 0 : i32
    return %c0_i32, %c0_i32_0 : i32, i32
  }
  func.func @transform_4(%arg0: i32) -> (i32, i32) {
    %c0_i32 = arith.constant 0 : i32
    %c0_i32_0 = arith.constant 0 : i32
    %c0_i32_1 = arith.constant 0 : i32
    return %c0_i32, %c0_i32_0 : i32, i32
  }
  func.func @transform_5(%arg0: i32) -> (i32, i32) {
    %c0_i32 = arith.constant 0 : i32
    %c0_i32_0 = arith.constant 0 : i32
    %c0_i32_1 = arith.constant 0 : i32
    return %c0_i32, %c0_i32_0 : i32, i32
  }
  func.func @transform_6(%arg0: i32) -> (i32, i32) {
    %c0_i32 = arith.constant 0 : i32
    %c0_i32_0 = arith.constant 0 : i32
    %c0_i32_1 = arith.constant 0 : i32
    return %c0_i32, %c0_i32_0 : i32, i32
  }
  func.func @transform_7(%arg0: i32) -> i32 {
    %c0_i32 = arith.constant 0 : i32
    %c0_i32_0 = arith.constant 0 : i32
    return %c0_i32 : i32
  }
}

</mosaic_0001>

<bundles_post_ra>
// kernel: tpu_custom_call.1
= control target key start
LH: loop header
LB: loop body
LE: loop exit
PB: predicated region body
PF: predicated region fallthrough
CT: control target
= control target key end

     0   :  { %12 = vsyncpa [#allocation5], 0  ;;  %s422_s0 = inlined_call_operand.hbm [shape: f32[8,128], index: 0, kind: input, shape index: {}]   ;;  %s423_s1 = inlined_call_operand.hbm [shape: f32[8,128], index: 1, kind: input, shape index: {}]   ;;  %s424_s2 = inlined_call_operand.hbm [shape: f32[8,128], index: 2, kind: input, shape index: {}]   ;;  %s425_s3 = inlined_call_operand.hbm [shape: f32[8,128], index: 3, kind: input, shape index: {}]   ;;  %s426_s4 = inlined_call_operand.hbm [shape: f32[8,128], index: 4, kind: input, shape index: {}]   ;;  %s427_s5 = inlined_call_operand.vmem [shape: f32[8,128], index: 5, kind: input, shape index: {}]   ;;  %s428_s6 = inlined_call_operand.hbm [shape: f32[8,128], index: 6, kind: input, shape index: {}]   ;;  %s429_s7 = inlined_call_operand.hbm [shape: f32[4], index: 7, kind: output, shape index: {}]  }
   0x1   :  { %13 = vsyncpa [#allocation8], 0 }
   0x2   :  { %14 = vsyncpa [#allocation11], 0 }
   0x3   :  { %15 = vsyncpa [#allocation14], 0 }
   0x4   :  { %16 = vsyncpa [#allocation6], 0  ;;  %s351_s24 = smov [#allocation7]   ;;  %s352_s26 = smov [#allocation10]  }
   0x5   :  { %s33_s25 = sshll.u32 %s351_s24, 4  ;;  %s53_s27 = sshll.u32 %s352_s26, 4  ;;  %s34_s25 = int_to_ptr.vmem [resolvable:$true] %s33_s25  ;;  %s54_s27 = int_to_ptr.vmem [resolvable:$true] %s53_s27 }
   0x6   :  { %s221_s28 = scalar_lea.vmem %s34_s25, 128  ;;  %p226_p1 = scmp.lt.s32.totalorder %s34_s25, %s34_s25 }
   0x7   :  { %p222_p0 = scmp.ne.s32.totalorder %s34_s25, %s221_s28  ;;  %p227_p2 = scmp.lt.s32.totalorder %s221_s28, %s221_s28 }
   0x9   :  { %p228_p3 = por %p227_p2, %p226_p1 }
   0xb   :  { %p229_p4 = pnand %p228_p3, %p222_p0 }
   0xd   :  { %232 = shalt.err (!%p229_p4)
}
   0xe   :  { %36 = dma.hbm_to_vmem [thread:$0]  %s423_s1, 128, %s34_s25, [#allocation8]  }
   0xf   :  { %s241_s8 = scalar_lea.vmem %s54_s27, 128  ;;  %p246_p6 = scmp.lt.s32.totalorder %s54_s27, %s54_s27 }
  0x10   :  { %p242_p5 = scmp.ne.s32.totalorder %s54_s27, %s241_s8  ;;  %p247_p7 = scmp.lt.s32.totalorder %s241_s8, %s241_s8 }
  0x12   :  { %p248_p8 = por %p247_p7, %p246_p6 }
  0x14   :  { %p249_p9 = pnand %p248_p8, %p242_p5 }
  0x16   :  { %252 = shalt.err (!%p249_p9)
}
  0x17   :  { %56 = dma.hbm_to_vmem [thread:$0]  %s425_s3, 128, %s54_s27, [#allocation11]  }
  0x18   :  { %s353_s11 = smov [#allocation4]   ;;  %s354_s13 = smov [#allocation9]  }
  0x19   :  { %s23_s12 = sshll.u32 %s353_s11, 4  ;;  %s43_s14 = sshll.u32 %s354_s13, 4  ;;  %s24_s12 = int_to_ptr.vmem [resolvable:$true] %s23_s12  ;;  %s44_s14 = int_to_ptr.vmem [resolvable:$true] %s43_s14 }
  0x1a   :  { %s261_s15 = scalar_lea.vmem %s24_s12, 128  ;;  %p266_p11 = scmp.lt.s32.totalorder %s24_s12, %s24_s12 }
  0x1b   :  { %p262_p10 = scmp.ne.s32.totalorder %s24_s12, %s261_s15  ;;  %p267_p12 = scmp.lt.s32.totalorder %s261_s15, %s261_s15 }
  0x1d   :  { %p268_p13 = por %p267_p12, %p266_p11 }
  0x1f   :  { %p269_p0 = pnand %p268_p13, %p262_p10 }
  0x21   :  { %272 = shalt.err (!%p269_p0)
}
  0x22   :  { %26 = dma.hbm_to_vmem [thread:$0]  %s422_s0, 128, %s24_s12, [#allocation5]  }
  0x23   :  { %s281_s17 = scalar_lea.vmem %s44_s14, 128  ;;  %p286_p2 = scmp.lt.s32.totalorder %s44_s14, %s44_s14 }
  0x24   :  { %p282_p1 = scmp.ne.s32.totalorder %s44_s14, %s281_s17  ;;  %p287_p3 = scmp.lt.s32.totalorder %s281_s17, %s281_s17 }
  0x26   :  { %p288_p4 = por %p287_p3, %p286_p2 }
  0x28   :  { %p289_p5 = pnand %p288_p4, %p282_p1 }
  0x2a   :  { %292 = shalt.err (!%p289_p5)
}
  0x2b   :  { %46 = dma.hbm_to_vmem [thread:$0]  %s424_s2, 128, %s44_s14, [#allocation8]  }
  0x2c   :  { %s355_s19 = smov [#allocation12]   ;;  %s356_s21 = smov [#allocation13]  }
  0x2d   :  { %s63_s20 = sshll.u32 %s355_s19, 4  ;;  %s75_s22 = sshll.u32 %s356_s21, 4  ;;  %s64_s20 = int_to_ptr.vmem [resolvable:$true] %s63_s20  ;;  %s76_s22 = int_to_ptr.vmem [resolvable:$true] %s75_s22 }
  0x2e   :  { %s301_s23 = scalar_lea.vmem %s64_s20, 128  ;;  %p306_p7 = scmp.lt.s32.totalorder %s64_s20, %s64_s20 }
  0x2f   :  { %p302_p6 = scmp.ne.s32.totalorder %s64_s20, %s301_s23  ;;  %p307_p8 = scmp.lt.s32.totalorder %s301_s23, %s301_s23 }
  0x31   :  { %p308_p9 = por %p307_p8, %p306_p7 }
  0x33   :  { %p309_p10 = pnand %p308_p9, %p302_p6 }
  0x35   :  { %312 = shalt.err (!%p309_p10)
}
  0x36   :  { %66 = dma.hbm_to_vmem [thread:$0]  %s426_s4, 128, %s64_s20, [#allocation11]  }
  0x37   :  { %s321_s25 = scalar_lea.vmem %s76_s22, 128  ;;  %p326_p12 = scmp.lt.s32.totalorder %s76_s22, %s76_s22 }
  0x38   :  { %p322_p11 = scmp.ne.s32.totalorder %s76_s22, %s321_s25  ;;  %p327_p13 = scmp.lt.s32.totalorder %s321_s25, %s321_s25 }
  0x3a   :  { %p328_p0 = por %p327_p13, %p326_p12 }
  0x3c   :  { %p329_p1 = pnand %p328_p0, %p322_p11 }
  0x3e   :  { %332 = shalt.err (!%p329_p1)
}
  0x3f   :  { %78 = dma.hbm_to_vmem [thread:$0]  %s428_s6, 128, %s76_s22, [#allocation14]  }
  0x40   :  { %341 = dma.done.wait [#allocation5], 128  }
  0x41   :  { %342 = vsyncadd [#allocation5], 4294967168 }
  0x42   :  { %343 = dma.done.wait [#allocation8], 256  }
  0x43   :  { %344 = vsyncadd [#allocation8], 4294967040 }
  0x44   :  { %345 = dma.done.wait [#allocation11], 256  }
  0x45   :  { %346 = vsyncadd [#allocation11], 4294967040 }
  0x46   :  { %347 = dma.done.wait [#allocation14], 128  }
  0x47   :  { %348 = vsyncadd [#allocation14], 4294967168  ;;  %v102_v0 = vld [vmem:[#allocation9] sm:$0xff]  ;;  %v126_v1 = vld [vmem:[#allocation13] sm:$0xff]  ;;  %s357_s30 = smov [#allocation15]  }
  0x48   :  { %v127_v2 = vld [vmem:[%s427_s5] sm:$0xff]  ;;  %103 = vadd.xlane.f32.xlu0 %v102_v0  ;;  %v112_v4 = vld [vmem:[#allocation10] sm:$0xff]  ;;  %vm128_vm0 = vcmp.ne.f32.partialorder %v126_v1, 0.0  ;;  %v148_v8 = vld [vmem:[#allocation7] sm:$0xff] }
  0x49   :  { %v129_v3 = vsub.f32 %v127_v2, %v126_v1  ;;  %v114_v5 = vld [vmem:[#allocation12] sm:$0xff]  ;;  %v113_v7 = vadd.f32 0.5, %v112_v4 }
  0x4a   :  { %v147_v6 = vld [vmem:[#allocation4] sm:$0xff] }
  0x4b   :  { %v130_v9 = vand.u32 2147483647, %v129_v3  ;;  %v149_v10 = vsub.f32 %v147_v6, %v148_v8  ;;  %v115_v11 = vsub.f32 %v113_v7, %v114_v5 }
  0x4d   :  { %v131_v12 = vsel %vm128_vm0, %v130_v9, 0.0  ;;  %v116_v13 = vand.u32 2147483647, %v115_v11  ;;  %v150_v14 = vand.u32 2147483647, %v149_v10 }
  0x4e   :  { %132 = vadd.xlane.f32.xlu1 %v131_v12 }
  0x4f   :  { %117 = vadd.xlane.f32.xlu0 %v116_v13 }
  0x52   :  { %159 = vadd.xlane.f32.xlu1 %v150_v14 }
  0xd1   :  { %v104_v15 = vpop.xlane.xlu0 %103 }
  0xd2   :  { %v105_v16 = vrot.slane %v104_v15, 4 }
  0xd4   :  { %v106_v17 = vadd.f32 %v105_v16, %v104_v15 }
  0xd6   :  { %v107_v18 = vrot.slane %v106_v17, 2 }
  0xd7   :  { %v133_v19 = vpop.xlane.xlu1 %132 }
  0xd8   :  { %v134_v20 = vrot.slane %v133_v19, 4  ;;  %v118_v21 = vpop.xlane.xlu0 %117  ;;  %v108_v22 = vadd.f32 %v107_v18, %v106_v17 }
  0xd9   :  { %v119_v24 = vrot.slane %v118_v21, 4 }
  0xda   :  { %v135_v23 = vadd.f32 %v134_v20, %v133_v19  ;;  %v109_v26 = vrot.slane %v108_v22, 1 }
  0xdb   :  { %v160_v25 = vpop.xlane.xlu1 %159  ;;  %v120_v28 = vadd.f32 %v119_v24, %v118_v21 }
  0xdc   :  { %v136_v27 = vrot.slane %v135_v23, 2  ;;  %v161_v29 = vrot.slane %v160_v25, 4  ;;  %v110_v30 = vadd.f32 %v109_v26, %v108_v22 }
  0xdd   :  { %v121_v31 = vrot.slane %v120_v28, 2 }
  0xde   :  { %v162_v32 = vadd.f32 %v161_v29, %v160_v25  ;;  %v137_v33 = vadd.f32 %v136_v27, %v135_v23  ;;  %198 = vpush %v110_v30 }
  0xdf   :  { %v122_v34 = vadd.f32 %v121_v31, %v120_v28 }
  0xe0   :  { %v163_v35 = vrot.slane %v162_v32, 2  ;;  %v138_v36 = vrot.slane %v137_v33, 1 }
  0xe1   :  { %v123_v38 = vrot.slane %v122_v34, 1 }
  0xe2   :  { %v164_v37 = vadd.f32 %v163_v35, %v162_v32  ;;  %v139_v39 = vadd.f32 %v138_v36, %v137_v33 }
  0xe3   :  { %v124_v40 = vadd.f32 %v123_v38, %v122_v34 }
  0xe4   :  { %v165_v41 = vrot.slane %v164_v37, 1 }
  0xe5   :  { %200 = vpush %v124_v40 }
  0xe6   :  { %v166_v42 = vadd.f32 %v165_v41, %v164_v37  ;;  %202 = vpush %v139_v39 }
  0xe8   :  { %204 = vpush %v166_v42 }
 0x10f   :  { %s199_s5 = spop %198 }
 0x110   :  { %172 = sst [smem:[#allocation15 + $0x1]] %s199_s5 }
 0x116   :  { %s201_s6 = spop %200 }
 0x117   :  { %175 = sst [smem:[#allocation15 + $0x2]] %s201_s6  ;;  %s203_s28 = spop %202 }
 0x118   :  { %178 = sst [smem:[#allocation15 + $0x3]] %s203_s28 }
 0x119   :  { %s205_s29 = spop %204 }
 0x11a   :  { %169 = sst [smem:[#allocation15]] %s205_s29 }
 0x11b   :  { %186 = dma.smem_to_hbm %s357_s30, 16, %s429_s7, [#allocation6]  }
 0x11c   :  { %349 = dma.done.wait [#allocation6], 16  }
 0x11d   :  { %350 = vsyncadd [#allocation6], 4294967280 }
 0x11e   :  { %190 = sfence }
 0x11f   :  { %191 = vsyncpa [#allocation5], 1 }
 0x120   :  { %192 = vsyncpa [#allocation8], 1 }
 0x121   :  { %193 = vsyncpa [#allocation11], 1 }
 0x122   :  { %194 = vsyncpa [#allocation14], 1 }
 0x123   :  { %195 = vsyncpa [#allocation6], 1 }

</bundles_post_ra>
